<compile_context>
chip_gen: v7x
topology: tpu7x:2x2x1
jax: 0.10.0
libtpu: 0.0.40
codegen_flags: <defaults>
</compile_context>

<pallas_src>
import functools

import jax
import jax.numpy as jnp
from jax import lax
from jax.experimental import pallas as pl
from jax.experimental.pallas import tpu as pltpu

LANES = 128          # vreg lane width (last dim)
SUB = 8              # vreg sublane height
TM_TARGET = 4096     # rows per input tile: 4096 * 128 * 4 B = 2 MiB (f32)
CHUNK_ROWS = 512     # in-kernel compute chunk (bounds live f32 temporaries)


def _round_up(a, b):
    return -(-a // b) * b


def _cdiv(a, b):
    return -(-a // b)


def _focal_partial_kernel(x_ref, t_ref, o_ref, *, alpha, gamma, chunk,
                          n_chunks, tile_rows, valid_rows, needs_mask):
    """One grid step: a (tile_rows, 128) tile -> one (8, 128) partial-sum block."""
    o_ref[...] = jnp.zeros_like(o_ref)
    tile_row0 = pl.program_id(0) * tile_rows

    def accumulate(c):
        r0 = c * chunk
        if not isinstance(r0, int):
            r0 = pl.multiple_of(r0, chunk)
        x = x_ref[pl.ds(r0, chunk), :].astype(jnp.float32)
        t = t_ref[pl.ds(r0, chunk), :].astype(jnp.float32)

        # Numerically stable BCE-with-logits (== F.binary_cross_entropy_with_logits):
        #   bce = max(x, 0) - x * t + log1p(exp(-|x|))
        bce = jnp.maximum(x, 0.0) - x * t + jnp.log1p(jnp.exp(-jnp.abs(x)))
        pt = jnp.exp(-bce)
        d = 1.0 - pt

        g_int = int(gamma)
        if float(gamma) == float(g_int) and 0 <= g_int <= 16:
            w = lax.integer_pow(d, g_int)    # VPU multiply chain
        else:
            w = d ** gamma                   # general fallback (EUP exp/log)
        f = alpha * w * bce                  # (chunk, 128) f32

        if needs_mask:
            # Static row mask for the ragged last grid tile: rows past the end
            # of the array hold garbage in the padded VMEM block -> zero them.
            row = (tile_row0 + r0
                   + lax.broadcasted_iota(jnp.int32, (chunk, LANES), 0))
            f = jnp.where(row < valid_rows, f, 0.0)

        # Fold the chunk's sublanes down to one (8, 128) vreg-shaped partial
        # sum with pure elementwise VPU adds; the single cross-lane reduction
        # happens once, in the JAX wrapper.
        o_ref[...] += jnp.sum(f.reshape(chunk // SUB, SUB, LANES), axis=0)

    if n_chunks == 1:
        accumulate(0)
    else:
        def body(c, carry):
            accumulate(c)
            return carry
        lax.fori_loop(0, n_chunks, body, 0)


def weighted_focal_loss(inputs, targets, alpha=0.25, gamma=2):
    """Scalar mean focal loss; forward semantics identical to the PyTorch module."""
    assert inputs.shape == targets.shape
    n_valid = int(inputs.size)
    if n_valid == 0:
        return jnp.float32(jnp.nan)   # torch: mean of an empty tensor is nan

    x = inputs.reshape(-1)
    t = targets.reshape(-1)

    # Pad only up to a 128-lane multiple (and at least one 8x128 row group),
    # using a *neutral* element (logit=-100, target=0) whose focal loss is
    # exactly 0.0 in f32.  For lane-multiple inputs (the common case) this is
    # a no-op: no full-array copy, unlike padding up to a tile multiple.
    padded_len = max(_round_up(n_valid, LANES), SUB * LANES)
    if padded_len != n_valid:
        # TODO(synk): for large non-lane-multiple inputs this still makes one
        # padded copy; a bulk-kernel + tiny-jnp-tail split would avoid it.
        x = jnp.pad(x, (0, padded_len - n_valid), constant_values=-100.0)
        t = jnp.pad(t, (0, padded_len - n_valid), constant_values=0.0)

    rows = padded_len // LANES
    x2 = x.reshape(rows, LANES)
    t2 = t.reshape(rows, LANES)

    # Tile geometry: tm rows/tile (multiple of 8, capped at TM_TARGET), split
    # so there are >= 2 grid tiles whenever possible (v7x has 2 TensorCores
    # and the grid axis is "parallel"), and quantized to CHUNK_ROWS so the
    # in-kernel chunk loop divides evenly.  The last tile may be ragged; it is
    # masked in-kernel rather than padded.
    tm = min(TM_TARGET, _round_up(rows, SUB))
    if rows > SUB:
        tm = min(tm, _round_up(_cdiv(rows, 2), SUB))
    if tm > CHUNK_ROWS:
        tm = (tm // CHUNK_ROWS) * CHUNK_ROWS
    chunk = min(CHUNK_ROWS, tm)
    n_chunks = tm // chunk
    n_tiles = _cdiv(rows, tm)
    needs_mask = (rows % tm) != 0

    kernel = functools.partial(
        _focal_partial_kernel,
        alpha=float(alpha), gamma=gamma, chunk=chunk, n_chunks=n_chunks,
        tile_rows=tm, valid_rows=rows, needs_mask=needs_mask)

    n_elems = rows * LANES
    cost = pl.CostEstimate(
        flops=12 * n_elems,
        transcendentals=3 * n_elems,
        bytes_accessed=int(x2.size * x2.dtype.itemsize
                           + t2.size * t2.dtype.itemsize
                           + n_tiles * SUB * LANES * 4),
    )

    partials = pl.pallas_call(
        kernel,
        out_shape=jax.ShapeDtypeStruct((n_tiles * SUB, LANES), jnp.float32),
        grid_spec=pltpu.PrefetchScalarGridSpec(
            num_scalar_prefetch=0,
            grid=(n_tiles,),
            in_specs=[
                pl.BlockSpec((tm, LANES), lambda i: (i, 0)),
                pl.BlockSpec((tm, LANES), lambda i: (i, 0)),
            ],
            out_specs=pl.BlockSpec((SUB, LANES), lambda i: (i, 0)),
        ),
        compiler_params=pltpu.CompilerParams(
            # Independent per-tile outputs -> fully parallel grid axis
            # (sharded across both TensorCores on v7x).
            dimension_semantics=("parallel",),
            # ~8 MiB pipelined input buffers + ~2 MiB chunk-sized temporaries;
            # 32 MiB is safe on v5e/v6e (128 MiB VMEM) and v7x (64 MiB).
            vmem_limit_bytes=32 * 1024 * 1024,
        ),
        cost_estimate=cost,
    )(x2, t2)

    return jnp.sum(partials) / jnp.float32(n_valid)


if __name__ == "__main__":
    key = jax.random.PRNGKey(0)
    k_x, k_t = jax.random.split(key)

    # Small NCHW-shaped example: batch=2, channels=4, spatial=16x16.
    shape = (2, 4, 16, 16)
    inputs = jax.random.normal(k_x, shape, dtype=jnp.float32)             # logits
    targets = jax.random.bernoulli(k_t, 0.5, shape).astype(jnp.float32)   # {0,1}

    loss = weighted_focal_loss(inputs, targets, alpha=0.25, gamma=2)
    loss = jax.block_until_ready(loss)

    # Pure-JAX reference check (same formula as the PyTorch module).
    bce = (jnp.maximum(inputs, 0.0) - inputs * targets
           + jnp.log1p(jnp.exp(-jnp.abs(inputs))))
    pt = jnp.exp(-bce)
    ref = jnp.mean(0.25 * (1.0 - pt) ** 2 * bce)
    assert jnp.allclose(loss, ref, rtol=1e-5, atol=1e-6), (loss, ref)

    print("KERNEL_OK")
</pallas_src>

<mosaic_0001>
module attributes {stable_mosaic.version = 11 : i64} {
  func.func @_focal_partial_kernel(%arg0: i32, %arg1: memref<8x128xf32, #tpu.memory_space<vmem>>, %arg2: memref<8x128xf32, #tpu.memory_space<vmem>>, %arg3: memref<8x128xf32, #tpu.memory_space<vmem>>) attributes {dimension_semantics = [#tpu.dimension_semantics<parallel>], iteration_bounds = array<i64: 2>, scalar_prefetch = 0 : i64, scratch_operands = 0 : i64, tpu.core_type = #tpu.core_type<tc>, window_params = [{transform_indices = @transform_0, window_bounds = array<i64: 8, 128>}, {transform_indices = @transform_1, window_bounds = array<i64: 8, 128>}, {transform_indices = @transform_2, window_bounds = array<i64: 8, 128>}]} {
    %cst = arith.constant 0.000000e+00 : f32
    %0 = vector.broadcast %cst : f32 to vector<8x128xf32>
    %c0 = arith.constant 0 : index
    %c0_0 = arith.constant 0 : index
    %1 = vector.load %arg3[%c0, %c0_0] : memref<8x128xf32, #tpu.memory_space<vmem>>, vector<8x128xf32>
    tpu.vector_store %arg3[%c0, %c0_0], %0 {strides = array<i32>} : memref<8x128xf32, #tpu.memory_space<vmem>>, vector<8x128xf32>,
    %c0_1 = arith.constant 0 : index
    %c0_2 = arith.constant 0 : index
    %2 = vector.load %arg1[%c0_1, %c0_2] : memref<8x128xf32, #tpu.memory_space<vmem>>, vector<8x128xf32>
    %c0_3 = arith.constant 0 : index
    %c0_4 = arith.constant 0 : index
    %3 = vector.load %arg2[%c0_3, %c0_4] : memref<8x128xf32, #tpu.memory_space<vmem>>, vector<8x128xf32>
    %cst_5 = arith.constant 0.000000e+00 : f32
    %4 = vector.broadcast %cst_5 : f32 to vector<8x128xf32>
    %5 = arith.maximumf %2, %4 : vector<8x128xf32>
    %6 = arith.mulf %2, %3 : vector<8x128xf32>
    %7 = arith.subf %5, %6 : vector<8x128xf32>
    %8 = math.absf %2 : vector<8x128xf32>
    %cst_6 = arith.constant 0.000000e+00 : f32
    %9 = vector.broadcast %cst_6 : f32 to vector<8x128xf32>
    %10 = arith.subf %9, %8 : vector<8x128xf32>
    %11 = math.exp %10 : vector<8x128xf32>
    %12 = math.log1p %11 : vector<8x128xf32>
    %13 = arith.addf %7, %12 : vector<8x128xf32>
    %cst_7 = arith.constant 0.000000e+00 : f32
    %14 = vector.broadcast %cst_7 : f32 to vector<8x128xf32>
    %15 = arith.subf %14, %13 : vector<8x128xf32>
    %16 = math.exp %15 : vector<8x128xf32>
    %cst_8 = arith.constant 1.000000e+00 : f32
    %17 = vector.broadcast %cst_8 : f32 to vector<8x128xf32>
    %18 = arith.subf %17, %16 : vector<8x128xf32>
    %19 = arith.mulf %18, %18 : vector<8x128xf32>
    %cst_9 = arith.constant 2.500000e-01 : f32
    %20 = vector.broadcast %cst_9 : f32 to vector<8x128xf32>
    %21 = arith.mulf %20, %19 : vector<8x128xf32>
    %22 = arith.mulf %21, %13 : vector<8x128xf32>
    %c0_10 = arith.constant 0 : index
    %c0_11 = arith.constant 0 : index
    %23 = vector.load %arg3[%c0_10, %c0_11] : memref<8x128xf32, #tpu.memory_space<vmem>>, vector<8x128xf32>
    %24 = vector.shape_cast %22 : vector<8x128xf32> to vector<1x8x128xf32>
    %cst_12 = arith.constant dense<0.000000e+00> : vector<8x128xf32>
    %25 = vector.multi_reduction <add>, %24, %cst_12 [0] : vector<1x8x128xf32> to vector<8x128xf32>
    %26 = arith.addf %23, %25 : vector<8x128xf32>
    %c0_13 = arith.constant 0 : index
    %c0_14 = arith.constant 0 : index
    %27 = vector.load %arg3[%c0_13, %c0_14] : memref<8x128xf32, #tpu.memory_space<vmem>>, vector<8x128xf32>
    tpu.vector_store %arg3[%c0_13, %c0_14], %26 {strides = array<i32>} : memref<8x128xf32, #tpu.memory_space<vmem>>, vector<8x128xf32>,
    return
  }
  func.func @transform_0(%arg0: i32) -> (i32, i32) {
    %c0_i32 = arith.constant 0 : i32
    %c0_i32_0 = arith.constant 0 : i32
    return %arg0, %c0_i32 : i32, i32
  }
  func.func @transform_1(%arg0: i32) -> (i32, i32) {
    %c0_i32 = arith.constant 0 : i32
    %c0_i32_0 = arith.constant 0 : i32
    return %arg0, %c0_i32 : i32, i32
  }
  func.func @transform_2(%arg0: i32) -> (i32, i32) {
    %c0_i32 = arith.constant 0 : i32
    %c0_i32_0 = arith.constant 0 : i32
    return %arg0, %c0_i32 : i32, i32
  }
}

</mosaic_0001>

<bundles_post_ra>
// kernel: tpu_custom_call.1
= control target key start
LH: loop header
LB: loop body
LE: loop exit
PB: predicated region body
PF: predicated region fallthrough
CT: control target
= control target key end

     0   :  { %7 = vsyncpa [#allocation3], 0  ;;  %s771_s0 = inlined_call_operand.hbm [shape: f32[16,128], index: 0, kind: input, shape index: {}]   ;;  %s772_s1 = inlined_call_operand.hbm [shape: f32[16,128], index: 1, kind: input, shape index: {}]   ;;  %s773_s2 = inlined_call_operand.hbm [shape: f32[16,128], index: 2, kind: output, shape index: {}]  }
   0x1   :  { %9 = vsyncpa [#allocation3 + $0x1], 0 }
   0x2   :  { %10 = vsyncpa [#allocation6], 0 }
   0x3   :  { %12 = vsyncpa [#allocation6 + $0x1], 0 }
   0x4   :  { %13 = vsyncpa [#allocation4], 0 }
   0x5   :  { %15 = vsyncpa [#allocation4 + $0x1], 0  ;;  %s557_s9 = smov 0   ;;  %s559_s10 = smov 0  }
   0x6   :  { %s561_s11 = smov 0   ;;  %s563_s12 = smov 0  }
   0x7 LB: > { %s578_s13 = sadd.s32 4294967295, %s537_s12   ;;  %s334_s14 = sadd.s32 4294967294, %s537_s12   ;;  %s537_s12 = sphi %s563_s12, %s792_s12   ;;  %s533_s11 = sphi %s561_s11, %s791_s11   ;;  %s529_s10 = sphi %s559_s10, %s790_s10   ;;  %s525_s9 = sphi %s557_s9, %s789_s9  }
   0x8   : > { %s582_s15 = sadd.s32 1, %s537_s12   ;;  %s28_s16 = sadd.s32 1, %s533_s11 }
   0x9   : > { %s25_s17 = ssub.s32 %s537_s12, %s582_s15  ;;  %p35_p0 = scmp.ne.s32.totalorder %s533_s11, %s529_s10 }
   0xa   : > { %p26_p1 = scmp.eq.s32.totalorder %s25_s17, 0  ;;  %p36_p2 = scmp.eq.s32.totalorder %s537_s12, 0 }
   0xb   : > { %p41_p3 = scmp.ne.s32.totalorder %s529_s10, %s525_s9  ;;  %p42_p4 = scmp.eq.s32.totalorder %s578_s13, 0 }
   0xc   : > { %s594_s18 = scalar_select %p26_p1, %s533_s11, %s28_s16  }
   0xd   : > { %p596_p5 = por %p36_p2, %p35_p0  ;;  %p600_p6 = por %p42_p4, %p41_p3 }
   0xe   : > { %p91_p7 = scmp.eq.s32.totalorder %s578_s13, 1  ;;  %p97_p8 = scmp.eq.s32.totalorder %s334_s14, 1 }
   0xf   : > { %s777_s20 = scalar_select %p600_p6, 1, 0 }
  0x10   : > { %p366_p10 = scmp.lt.s32.totalorder %s537_s12, 2  ;;  %p607_p11 = por %p91_p7, %p35_p0 }
  0x11   : > { %p611_p12 = por %p97_p8, %p41_p3  ;;  %s616_s23 = sand.u32 1, %s533_s11  }
  0x12   : > { %s778_s21 = scalar_select %p607_p11, 1, 0 }
  0x13   : > { %s779_s22 = scalar_select %p611_p12, 1, 0 }
  0x14   : > { %s338_s24 = sshll.u32 %s537_s12, 7  ;;  %s337_s25 = sshll.u32 %s616_s23, 3 }
  0x15   : > { %s625_s28 = scalar_lea.hbm %s771_s0, %s338_s24  ;;  %s121_s29 = scalar_lea.vmem [#allocation2], %s337_s25 }
  0x16   : > { %s128_s30 = sshll.u32 %s121_s29, 4  ;;  %p631_p13 = pnand %p366_p10, %p596_p5  ;;  %s635_s30 = int_to_ptr.vmem [resolvable:$true] %s128_s30 }
  0x17   : > { %s118_s4 = scalar_lea.sflag [#allocation3], %s616_s23  ;;  %s407_s5 = scalar_lea.hbm %s625_s28, 128 }
  0x18   : > { %p408_p2 = scmp.ne.s32.totalorder %s625_s28, %s407_s5  ;;  %p409_p3 = pneg %p631_p13 }
  0x19   : > { %s412_s8 = scalar_lea.hbm %s771_s0, 256  ;;  %p413_p5 = scmp.lt.u32.totalorder %s625_s28, %s771_s0 }
  0x1a   : > { %p410_p4 = pnand %p409_p3, %p408_p2  ;;  %p414_p8 = scmp.lt.u32.totalorder %s412_s8, %s407_s5 }
  0x1b   : > { %p416_p9 = scmp.lt.u32.totalorder %s407_s5, %s625_s28 }
  0x1c   : > { %p411_p7 = pneg %p410_p4  ;;  %p415_p10 = por %p414_p8, %p413_p5 }
  0x1e   : > { %p417_p0 = por %p416_p9, %p415_p10 }
  0x20   : > { %p418_p1 = pnand %p417_p0, %p411_p7 }
  0x22   : > { %421 = shalt.err (!%p418_p1)
}
  0x23   : > { %s422_s17 = scalar_lea.vmem %s635_s30, 128  ;;  %s539_s19 = smov [#allocation2]  }
  0x24   : > { %p423_p2 = scmp.ne.s32.totalorder %s635_s30, %s422_s17  ;;  %s427_s26 = sshll.u32 %s539_s19, 4  ;;  %s428_s26 = int_to_ptr.vmem [resolvable:$false] %s427_s26 }
  0x25   : > { %s429_s27 = scalar_lea.vmem %s428_s26, 256  ;;  %p430_p11 = scmp.lt.s32.totalorder %s635_s30, %s428_s26 }
  0x26   : > { %p425_p4 = pnand %p423_p2, %p409_p3  ;;  %p431_p5 = scmp.lt.s32.totalorder %s429_s27, %s422_s17 }
  0x28   : > { %p426_p12 = pneg %p425_p4  ;;  %p432_p8 = por %p431_p5, %p430_p11 }
  0x2a   : > { %p433_p9 = pnand %p432_p8, %p426_p12 }
  0x2c   : > { %436 = shalt.err (!%p433_p9)
}
  0x2d   : > { %358 = dma.hbm_to_vmem [thread:$0]  (!%p631_p13), %s625_s28, 128, %s635_s30, %s118_s4  }
  0x2e   : > { %p781_p0 = scmp.lt.s32.totalorder %s537_s12, 3  ;;  %p782_p1 = scmp.ge.s32.totalorder %s537_s12, 1 }
  0x2f   : > { %s678_s7 = scalar_lea.hbm %s772_s1, %s338_s24  ;;  %s139_s8 = scalar_lea.vmem [#allocation5], %s337_s25 }
  0x30   : > { %p669_p7 = pnand %p782_p1, %p781_p0  ;;  %s146_s14 = sshll.u32 %s139_s8, 4  ;;  %s147_s14 = int_to_ptr.vmem [resolvable:$true] %s146_s14 }
  0x31   : > { %s136_s28 = scalar_lea.sflag [#allocation6], %s616_s23  ;;  %s437_s30 = scalar_lea.hbm %s678_s7, 128 }
  0x32   : > { %s783_s29 = scalar_select %p669_p7, 1, 0 }
  0x33   : > { %p438_p11 = scmp.ne.s32.totalorder %s678_s7, %s437_s30  ;;  %s442_s24 = scalar_lea.hbm %s772_s1, 256 }
  0x34   : > { %p443_p2 = scmp.lt.u32.totalorder %s678_s7, %s772_s1  ;;  %p444_p4 = scmp.lt.u32.totalorder %s442_s24, %s437_s30 }
  0x35   : > { %p440_p12 = pnand %p438_p11, %p409_p3  ;;  %p446_p8 = scmp.lt.u32.totalorder %s437_s30, %s678_s7 }
  0x36   : > { %p445_p5 = por %p444_p4, %p443_p2 }
  0x37   : > { %p441_p10 = pneg %p440_p12 }
  0x38   : > { %p447_p9 = por %p446_p8, %p445_p5 }
  0x3a   : > { %p448_p0 = pnand %p447_p9, %p441_p10 }
  0x3c   : > { %451 = shalt.err (!%p448_p0)
}
  0x3d   : > { %s452_s23 = scalar_lea.vmem %s147_s14, 128  ;;  %s540_s25 = smov [#allocation5]  }
  0x3e   : > { %p453_p1 = scmp.ne.s32.totalorder %s147_s14, %s452_s23  ;;  %s457_s26 = sshll.u32 %s540_s25, 4  ;;  %s458_s26 = int_to_ptr.vmem [resolvable:$false] %s457_s26 }
  0x3f   : > { %s459_s27 = scalar_lea.vmem %s458_s26, 256  ;;  %p460_p6 = scmp.lt.s32.totalorder %s147_s14, %s458_s26 }
  0x40   : > { %p455_p11 = pnand %p453_p1, %p409_p3  ;;  %p461_p7 = scmp.lt.s32.totalorder %s459_s27, %s452_s23 }
  0x42   : > { %p456_p12 = pneg %p455_p11  ;;  %p462_p2 = por %p461_p7, %p460_p6 }
  0x44   : > { %p463_p4 = pnand %p462_p2, %p456_p12 }
  0x46   : > { %466 = shalt.err (!%p463_p4)
}
  0x47   : > { %361 = dma.hbm_to_vmem [thread:$0]  (!%p631_p13), %s678_s7, 128, %s147_s14, %s136_s28  }
  0x48   : > { %p784_p10 = scmp.ne.s32.totalorder %s783_s29, 0 }
  0x49   : > { %s705_s5 = sand.u32 (!%p784_p10), 1, %s529_s10   ;;  %p785_p6 = scmp.ne.s32.totalorder (!%p784_p10), %s777_s20, 0 }
  0x4a   : > { %155 = sbr.rel (%p784_p10) target bundleno = 157 (0x9d), region = 28  ;;  %s708_s6 = sshll.u32 (!%p784_p10), %s705_s5, 3 }
  0x4b   : > { %s158_s8 = scalar_lea.sflag (!%p784_p10), [#allocation3], %s705_s5  ;;  %s161_s30 = scalar_lea.vmem (!%p784_p10), [#allocation2], %s708_s6 }
  0x51   : > { %512 = dma.done.wait (%p785_p6), %s158_s8, 128  }
  0x52   : > { %514 = vsyncadd (%p785_p6), %s158_s8, 4294967168  ;;  %s167_s3 = scalar_lea.sflag [#allocation6], %s705_s5  ;;  %s170_s29 = scalar_lea.vmem [#allocation5], %s708_s6 }
  0x53   : > { %516 = dma.done.wait (%p785_p6), %s167_s3, 128  }
  0x54   : > { %518 = vsyncadd (%p785_p6), %s167_s3, 4294967168  ;;  %v197_v0 = vld [vmem:[%s161_s30] sm:$0xff]  ;;  %v198_v7 = vld [vmem:[%s170_s29] sm:$0xff]  ;;  %s346_s20 = sshll.u32 %s578_s13, 7  ;;  %s195_s7 = scalar_lea.vmem [#allocation7], %s708_s6 }
  0x55   : > { %v202_v1 = vand.u32 2147483647, %v197_v0  ;;  %v199_v9 = vmax.f32 %v197_v0, 0.0  ;;  %v200_v10 = vmul.f32 %v198_v7, %v197_v0  ;;  %s241_s14 = sshll.u32 %s195_s7, 4  ;;  %s727_s16 = scalar_lea.hbm %s773_s2, %s346_s20  ;;  %s729_s14 = int_to_ptr.vmem [resolvable:$true] %s241_s14 }
  0x56   : > { %s228_s24 = scalar_lea.sflag [#allocation4], %s705_s5  ;;  %s467_s17 = scalar_lea.vmem %s729_s14, 128 }
  0x57   : > { %v203_v2 = vsub.f32 0.0, %v202_v1  ;;  %v201_v14 = vsub.f32 %v199_v9, %v200_v10  ;;  %p468_p13 = scmp.ne.s32.totalorder %s729_s14, %s467_s17  ;;  %p786_p3 = scmp.ne.s32.totalorder %s778_s21, 0 }
  0x58   : > { %s541_s13 = smov [#allocation7]  }
  0x59   : > { %v204_v3 = vmul.f32 1.442695, %v203_v2  ;;  %p469_p7 = pnand %p468_p13, %p786_p3  ;;  %s471_s19 = sshll.u32 %s541_s13, 4  ;;  %s472_s19 = int_to_ptr.vmem [resolvable:$false] %s471_s19 }
  0x5a   : > { %s473_s23 = scalar_lea.vmem %s472_s19, 256  ;;  %p474_p8 = scmp.lt.s32.totalorder %s729_s14, %s472_s19 }
  0x5b   : > { %401 = vpow2.f32 %v204_v3  ;;  %p470_p5 = pneg %p469_p7  ;;  %p475_p9 = scmp.lt.s32.totalorder %s473_s23, %s467_s17 }
  0x5d   : > { %p476_p0 = por %p475_p9, %p474_p8 }
  0x5f   : > { %p477_p1 = pnand %p476_p0, %p470_p5 }
  0x65   : > { %v402_v4 = vpop.eup %401 }
  0x66   : > { %v206_v5 = vadd.f32 1.0, %v402_v4  ;;  %v209_v6 = vmul.f32 -0.5, %v402_v4  ;;  %v212_v11 = vand.u32 2147483647, %v402_v4 }
  0x68   : > { %403 = vlog2.f32 %v206_v5  ;;  %v210_v8 = vadd.f32 1.0, %v209_v6  ;;  %vm213_vm0 = vcmp.lt.f32.partialorder %v212_v11, 0.0004427343 }
  0x6a   : > { %v211_v12 = vmul.f32 %v402_v4, %v210_v8 }
  0x72   : > { %v404_v13 = vpop.eup %403 }
  0x73   : > { %v208_v15 = vmul.f32 0.6931472, %v404_v13 }
  0x75   : > { %v214_v16 = vsel %vm213_vm0, %v211_v12, %v208_v15 }
  0x76   : > { %v215_v17 = vadd.f32 %v214_v16, %v201_v14 }
  0x78   : > { %v216_v18 = vsub.f32 0.0, %v215_v17 }
  0x7a   : > { %v217_v19 = vmul.f32 1.442695, %v216_v18 }
  0x7c   : > { %405 = vpow2.f32 %v217_v19 }
  0x86   : > { %v406_v20 = vpop.eup %405 }
  0x87   : > { %v219_v21 = vsub.f32 1.0, %v406_v20 }
  0x89   : > { %v220_v22 = vmul.f32 %v219_v21, %v219_v21 }
  0x8b   : > { %v221_v23 = vmul.f32 0.25, %v220_v22 }
  0x8d   : > { %v222_v24 = vmul.f32 %v221_v23, %v215_v17 }
  0x8f   : > { %226 = vst [vmem:[%s195_s7] sm:$0xff] %v222_v24 }
  0x90   : > { %480 = shalt.err (!%p477_p1)
}
  0x91   : > { %s481_s25 = scalar_lea.hbm %s727_s16, 128  ;;  %s485_s5 = scalar_lea.hbm %s773_s2, 256 }
  0x92   : > { %p482_p11 = scmp.ne.s32.totalorder %s727_s16, %s481_s25  ;;  %p486_p4 = scmp.lt.u32.totalorder %s727_s16, %s773_s2 }
  0x93   : > { %p487_p10 = scmp.lt.u32.totalorder %s485_s5, %s481_s25  ;;  %p489_p13 = scmp.lt.u32.totalorder %s481_s25, %s727_s16 }
  0x94   : > { %p483_p12 = pnand %p482_p11, %p786_p3 }
  0x95   : > { %p488_p6 = por %p487_p10, %p486_p4 }
  0x96   : > { %p484_p2 = pneg %p483_p12 }
  0x97   : > { %p490_p7 = por %p489_p13, %p488_p6 }
  0x99   : > { %p491_p5 = pnand %p490_p7, %p484_p2 }
  0x9b   : > { %494 = shalt.err (!%p491_p5)
}
  0x9c   : > { %353 = dma.vmem_to_hbm [thread:$0]  (%p786_p3), %s729_s14, 128, %s727_s16, %s228_s24  }
  0x9d PF: > { %s253_s30 = sand.u32 1, %s525_s9   ;;  %p787_p8 = scmp.ne.s32.totalorder %s779_s22, 0 }
  0x9e   : > { %p788_p9 = scmp.ge.s32.totalorder %s537_s12, 2  ;;  %s254_s3 = scalar_lea.sflag [#allocation4], %s253_s30 }
  0xa0   : > { %p363_p0 = pnand %p788_p9, %p787_p8 }
  0xa2   : > { %520 = dma.done.wait (!%p363_p0), %s254_s3, 128  }
  0xa3   : > { %522 = vsyncadd (!%p363_p0), %s254_s3, 4294967168  ;;  %p18_p1 = scmp.ge.s32.totalorder %s582_s15, 4   ;;  %s789_s9 = smov %s529_s10 }
  0xa4   : > { %s790_s10 = smov %s533_s11  ;;  %s791_s11 = smov %s594_s18 }
  0xa5   : > { %s792_s12 = smov %s582_s15  ;;  %20 = sbr.rel (!%p18_p1) target bundleno = 7 (0x7), region = 86 }
  0xac   :  { %259 = vsyncpa [#allocation3], 1 }
  0xad   :  { %261 = vsyncpa [#allocation3 + $0x1], 1 }
  0xae   :  { %262 = vsyncpa [#allocation6], 1 }
  0xaf   :  { %264 = vsyncpa [#allocation6 + $0x1], 1 }
  0xb0   :  { %265 = vsyncpa [#allocation4], 1 }
  0xb1   :  { %267 = vsyncpa [#allocation4 + $0x1], 1 }

</bundles_post_ra>
